<compile_context>
chip_gen: v7x
topology: tpu7x:2x2x1
jax: 0.10.0
libtpu: 0.0.40
codegen_flags: <defaults>
</compile_context>

<pallas_src>
import numpy as np
import jax
import jax.numpy as jnp
from jax.experimental import pallas as pl
from jax.experimental.pallas import tpu as pltpu

LEAKY_RELU_SLOPE = 0.1          # HYPERPARAMS['leaky_relu_slope']
BN_EPS = 1e-5                   # nn.BatchNorm2d default eps
LANE = 128
# Conv flops per byte of a stored-intermediate round trip above which pass-2 recompute is
# dropped in favour of storing the pass-1 conv tile (between v5e ~240 and v6e ~650 rooflines).
STORE_INTENSITY_THRESHOLD = 320.0


def _round_up(x, m):
    return ((x + m - 1) // m) * m


def _vmem_caps():
    """Generation-aware (limit, auto-tile budget): 128 MiB on v5e/v6e, 64 MiB on v7x."""
    cap = 64 * 1024 * 1024
    try:
        cap = int(pltpu.get_tpu_info().vmem_capacity_bytes)
    except Exception:
        pass
    return int(cap * 0.80), int(cap * 0.60)


def _probe_copy_kernel(x_ref, o_ref):
    o_ref[...] = x_ref[...]


_BUFFERED_OK = None


def _buffered_supported():
    """One-time probe: does this jax/Mosaic accept pipeline_mode=pl.Buffered(1)?"""
    global _BUFFERED_OK
    if _BUFFERED_OK is not None:
        return _BUFFERED_OK
    try:
        spec = pl.BlockSpec((8, 128), lambda i: (0, 0), pipeline_mode=pl.Buffered(1))
        out = pl.pallas_call(
            _probe_copy_kernel,
            out_shape=jax.ShapeDtypeStruct((8, 128), jnp.float32),
            grid=(1,),
            in_specs=[spec],
            out_specs=pl.BlockSpec((8, 128), lambda i: (0, 0)),
        )(jnp.ones((8, 128), jnp.float32))
        jax.block_until_ready(out)
        _BUFFERED_OK = True
    except Exception:
        _BUFFERED_OK = False
    return _BUFFERED_OK


def _spec(shape, index_map, nbuf=None):
    """BlockSpec helper; nbuf=1 single-buffers constant / slow-changing blocks."""
    if nbuf is not None and _buffered_supported():
        return pl.BlockSpec(shape, index_map, pipeline_mode=pl.Buffered(nbuf))
    return pl.BlockSpec(shape, index_map)


def _auto_tile_rows(Q, W_pad, stride, K, cin_pad, c_pad, KK,
                    slab_bytes, mxu_bytes, out_bytes, store_bytes, bufs, budget):
    """Largest 16-multiple row tile whose VMEM working set stays under `budget`."""
    flat_base = stride * (Q - 1) + (K - 1) * (W_pad + 1) + 1
    fixed = bufs * flat_base * cin_pad * slab_bytes        # resident per-image slab
    fixed += bufs * KK * cin_pad * c_pad * mxu_bytes        # folded weights
    fixed += 64 * c_pad * 4                                 # scale/shift/stat blocks + slack
    per_row = bufs * stride * cin_pad * slab_bytes          # slab growth from Q_pad rounding
    per_row += KK * cin_pad * mxu_bytes                     # lhs staging scratch
    per_row += 2 * c_pad * out_bytes                        # double-buffered output tile
    per_row += 2 * c_pad * store_bytes                      # conv intermediate (if stored)
    per_row += 2 * c_pad * 4 + 16                           # f32 acc + mask + slack
    avail = budget - fixed
    if avail < 16 * per_row:
        # TODO(synk): for very large H*W*Cin the resident slab alone exceeds the budget;
        # the proper fix is a windowed (halo) slab BlockSpec so VMEM is O(tile). Fall back
        # to the smallest tile here and rely on vmem_limit_bytes headroom.
        return 16
    tq = int(max(16, min(avail // per_row, 2048, _round_up(Q, 16))))
    return (tq // 16) * 16


def cnn_block_forward(x_nchw, w_oihw, gamma, beta, *, stride, padding,
                      tile_rows=None, mxu_dtype=jnp.bfloat16, out_dtype=jnp.float32,
                      store_conv=None, nchw_output=True):
    """Forward pass equivalent to PyTorch CNNBlock.forward (training-mode BatchNorm)."""
    N, Cin, H, W = x_nchw.shape
    Cout, Cin_w, K, K2 = w_oihw.shape
    assert Cin == Cin_w and K == K2
    s, p = int(stride), int(padding)

    H_pad, W_pad = H + 2 * p, W + 2 * p
    OH = (H_pad - K) // s + 1
    OW = (W_pad - K) // s + 1
    P = N * OH * OW                                # valid output positions (BN count)

    mxu_bytes = jnp.dtype(mxu_dtype).itemsize
    out_bytes = jnp.dtype(out_dtype).itemsize
    sub = 16 if mxu_bytes == 2 else 8              # packed-sublane-friendly contraction pad
    cin_pad = _round_up(Cin, sub)
    c_pad = _round_up(Cout, LANE)                  # lane-dense output channels
    KK = K * K
    CK = KK * cin_pad                              # folded contraction depth

    if store_conv is None:
        # flops per output element / bytes of a store+reload round trip of the intermediate
        store_conv = (2.0 * KK * cin_pad) / (2.0 * mxu_bytes) > STORE_INTENSITY_THRESHOLD

    # "Wide" output rows per image: q = oh*W_pad + ow_flat (only ow_flat < OW is valid).
    # TODO(synk): for stride>1 this wide layout wastes ~(1-1/s) of the conv flops/stores;
    #             a compact q = oh*round_up(OW, 16) layout would remove that.
    Q = OH * W_pad

    vmem_limit, vmem_budget = _vmem_caps()
    bufs = 1 if _buffered_supported() else 2
    slab_bytes = mxu_bytes
    store_bytes = mxu_bytes if store_conv else 0
    if tile_rows is None:
        TQ = _auto_tile_rows(Q, W_pad, s, K, cin_pad, c_pad, KK,
                             slab_bytes, mxu_bytes, out_bytes, store_bytes, bufs, vmem_budget)
    else:
        TQ = max(16, (int(tile_rows) // 16) * 16)
    Q_pad = _round_up(Q, TQ)
    num_tiles = Q_pad // TQ

    # Per-image flat-slab length so every shifted slice stays in bounds.
    needed = s * (Q_pad - 1) + (K - 1) * (W_pad + 1) + 1
    FLAT_IN = _round_up(max(needed, H_pad * W_pad), 32)

    # ---------------- wrapper-side layout plumbing (1x traffic) ----------------------------
    x_nhwc = jnp.transpose(x_nchw, (0, 2, 3, 1)).astype(mxu_dtype)      # slab stored as bf16
    x_sp = jnp.pad(x_nhwc, ((0, 0), (p, p), (p, p), (0, cin_pad - Cin)))
    x_flat = x_sp.reshape(N, H_pad * W_pad, cin_pad)
    x_flat = jnp.pad(x_flat, ((0, 0), (0, FLAT_IN - H_pad * W_pad), (0, 0)))
    x_flat2d = x_flat.reshape(N * FLAT_IN, cin_pad)

    # Weights: (Cout,Cin,K,K) -> taps folded into the contraction dim (KK*cin_pad, c_pad).
    w_taps = jnp.transpose(w_oihw.astype(jnp.float32), (2, 3, 1, 0)).reshape(KK, Cin, Cout)
    w_taps = jnp.pad(w_taps, ((0, 0), (0, cin_pad - Cin), (0, c_pad - Cout)))
    w_flat = w_taps.reshape(CK, c_pad).astype(mxu_dtype)

    gamma_p = jnp.pad(gamma.astype(jnp.float32), (0, c_pad - Cout))
    beta_p = jnp.pad(beta.astype(jnp.float32), (0, c_pad - Cout))

    # BN-stat validity mask over wide rows (excludes pad leftovers and tile padding).
    q_idx = np.arange(Q_pad)
    mask_np = ((q_idx % W_pad) < OW) & (q_idx < Q)
    stat_mask = jnp.asarray(mask_np.astype(np.float32)).reshape(Q_pad, 1)

    offs = [kh * W_pad + kw for kh in range(K) for kw in range(K)]   # tap -> flat row offset
    inv_count = 1.0 / float(P)

    # ---------------- kernels ---------------------------------------------------------------
    def _conv_tile(x_ref, w_ref, stage_ref, j):
        """Folded-tap conv tile: one (TQ, CK) @ (CK, c_pad) MXU matmul (f32 accumulate)."""
        q0 = j * TQ
        for r, off in enumerate(offs):
            start = s * q0 + off
            sl = pl.ds(start, TQ) if s == 1 else pl.ds(start, TQ, stride=s)
            stage_ref[:, r * cin_pad:(r + 1) * cin_pad] = x_ref[sl, :]
        return jnp.dot(stage_ref[...], w_ref[...], preferred_element_type=jnp.float32)

    def _stats_body(x_ref, w_ref, mask_ref, sum_ref, sumsq_ref, stage_ref):
        j = pl.program_id(1)

        @pl.when(j == 0)
        def _():
            sum_ref[...] = jnp.zeros_like(sum_ref)
            sumsq_ref[...] = jnp.zeros_like(sumsq_ref)

        acc = _conv_tile(x_ref, w_ref, stage_ref, j)
        am = acc * mask_ref[...]                                     # reuse masked product
        sum_ref[...] += jnp.sum(am, axis=0, keepdims=True)[None]
        sumsq_ref[...] += jnp.sum(am * acc, axis=0, keepdims=True)[None]
        return acc

    def _stats_kernel(x_ref, w_ref, mask_ref, sum_ref, sumsq_ref, stage_ref):
        _stats_body(x_ref, w_ref, mask_ref, sum_ref, sumsq_ref, stage_ref)

    def _stats_store_kernel(x_ref, w_ref, mask_ref, sum_ref, sumsq_ref, conv_ref, stage_ref):
        acc = _stats_body(x_ref, w_ref, mask_ref, sum_ref, sumsq_ref, stage_ref)
        conv_ref[...] = acc.astype(conv_ref.dtype)                   # bf16 intermediate

    def _bn_act_recompute_kernel(x_ref, w_ref, scale_ref, shift_ref, o_ref, stage_ref):
        j = pl.program_id(1)
        acc = _conv_tile(x_ref, w_ref, stage_ref, j)
        y = acc * scale_ref[...] + shift_ref[...]
        o_ref[...] = jnp.where(y > 0.0, y, LEAKY_RELU_SLOPE * y).astype(o_ref.dtype)

    def _bn_act_elem_kernel(conv_ref, scale_ref, shift_ref, o_ref):
        y = conv_ref[...].astype(jnp.float32) * scale_ref[...] + shift_ref[...]
        o_ref[...] = jnp.where(y > 0.0, y, LEAKY_RELU_SLOPE * y).astype(o_ref.dtype)

    # ---------------- pass 1: conv + per-image BN partial sums (optionally store conv) ------
    conv_flops = int(2 * N * Q_pad * CK * c_pad)
    slab_hbm = int(N * FLAT_IN * cin_pad * slab_bytes)
    w_hbm = int(CK * c_pad * mxu_bytes)

    stat_shape = jax.ShapeDtypeStruct((N, 1, c_pad), jnp.float32)
    in_specs_p1 = [
        _spec((FLAT_IN, cin_pad), lambda n, j: (n, 0), nbuf=1),      # per-image slab
        _spec((CK, c_pad), lambda n, j: (0, 0), nbuf=1),             # folded weights
        pl.BlockSpec((TQ, 1), lambda n, j: (j, 0)),                  # stats validity mask
    ]
    stat_out_specs = (pl.BlockSpec((1, 1, c_pad), lambda n, j: (n, 0, 0)),
                      pl.BlockSpec((1, 1, c_pad), lambda n, j: (n, 0, 0)))
    scratch_p1 = [pltpu.VMEM((TQ, CK), mxu_dtype)]
    cparams_p1 = pltpu.CompilerParams(dimension_semantics=("parallel", "arbitrary"),
                                      vmem_limit_bytes=vmem_limit)
    # TODO(synk): for N==1 the stats pass runs on a single TensorCore (v7x); splitting the
    #             tile axis into a leading parallel chunk axis would fix that.

    conv_hbm = None
    if store_conv:
        conv_shape = jax.ShapeDtypeStruct((N * Q_pad, c_pad), mxu_dtype)
        psum, psumsq, conv_hbm = pl.pallas_call(
            _stats_store_kernel,
            out_shape=(stat_shape, stat_shape, conv_shape),
            grid=(N, num_tiles),
            in_specs=in_specs_p1,
            out_specs=stat_out_specs + (
                pl.BlockSpec((TQ, c_pad), lambda n, j: (n * num_tiles + j, 0)),),
            scratch_shapes=scratch_p1,
            compiler_params=cparams_p1,
            cost_estimate=pl.CostEstimate(
                flops=conv_flops, transcendentals=0,
                bytes_accessed=slab_hbm + w_hbm + int(N * Q_pad * c_pad * mxu_bytes)),
        )(x_flat2d, w_flat, stat_mask)
    else:
        psum, psumsq = pl.pallas_call(
            _stats_kernel,
            out_shape=(stat_shape, stat_shape),
            grid=(N, num_tiles),
            in_specs=in_specs_p1,
            out_specs=stat_out_specs,
            scratch_shapes=scratch_p1,
            compiler_params=cparams_p1,
            cost_estimate=pl.CostEstimate(
                flops=conv_flops, transcendentals=0,
                bytes_accessed=slab_hbm + w_hbm + 2 * N * c_pad * 4),
        )(x_flat2d, w_flat, stat_mask)

    # ---------------- BN finalize hoisted to the wrapper (tiny XLA ops on (c_pad,)) ---------
    csum = jnp.sum(psum[:, 0, :], axis=0)
    csumsq = jnp.sum(psumsq[:, 0, :], axis=0)
    mean = csum * inv_count
    var = jnp.maximum(csumsq * inv_count - mean * mean, 0.0)
    # TODO(synk): E[x^2]-mean^2 in f32 can lose precision vs PyTorch's two-pass variance when
    #             |mean| >> std over very large reductions (shifted/Welford scheme would fix).
    scale = gamma_p * jax.lax.rsqrt(var + BN_EPS)          # padded channels: gamma=0 -> scale=0
    shift = beta_p - mean * scale
    scale2d = scale.reshape(1, c_pad)
    shift2d = shift.reshape(1, c_pad)

    # ---------------- pass 2: BN + LeakyReLU (recompute conv OR elementwise over stored) ----
    out_shape2 = jax.ShapeDtypeStruct((N * Q_pad, c_pad), out_dtype)
    if store_conv:
        total_tiles = N * num_tiles
        out2d = pl.pallas_call(
            _bn_act_elem_kernel,
            out_shape=out_shape2,
            grid=(total_tiles,),
            in_specs=[
                pl.BlockSpec((TQ, c_pad), lambda i: (i, 0)),
                _spec((1, c_pad), lambda i: (0, 0), nbuf=1),
                _spec((1, c_pad), lambda i: (0, 0), nbuf=1),
            ],
            out_specs=pl.BlockSpec((TQ, c_pad), lambda i: (i, 0)),
            compiler_params=pltpu.CompilerParams(dimension_semantics=("parallel",),
                                                 vmem_limit_bytes=vmem_limit),
            cost_estimate=pl.CostEstimate(
                flops=int(4 * N * Q_pad * c_pad), transcendentals=0,
                bytes_accessed=int(N * Q_pad * c_pad * (mxu_bytes + out_bytes))),
        )(conv_hbm, scale2d, shift2d)
    else:
        out2d = pl.pallas_call(
            _bn_act_recompute_kernel,
            out_shape=out_shape2,
            grid=(N, num_tiles),
            in_specs=[
                _spec((FLAT_IN, cin_pad), lambda n, j: (n, 0), nbuf=1),
                _spec((CK, c_pad), lambda n, j: (0, 0), nbuf=1),
                _spec((1, c_pad), lambda n, j: (0, 0), nbuf=1),
                _spec((1, c_pad), lambda n, j: (0, 0), nbuf=1),
            ],
            out_specs=pl.BlockSpec((TQ, c_pad), lambda n, j: (n * num_tiles + j, 0)),
            scratch_shapes=[pltpu.VMEM((TQ, CK), mxu_dtype)],
            compiler_params=pltpu.CompilerParams(
                dimension_semantics=("parallel", "parallel"),        # both TCs on v7x
                vmem_limit_bytes=vmem_limit),
            cost_estimate=pl.CostEstimate(
                flops=conv_flops + int(4 * N * Q_pad * c_pad), transcendentals=0,
                bytes_accessed=slab_hbm + w_hbm + int(N * Q_pad * c_pad * out_bytes)),
        )(x_flat2d, w_flat, scale2d, shift2d)

    # ---------------- wrapper-side un-padding / layout --------------------------------------
    out_nhwc = (out2d.reshape(N, Q_pad, c_pad)[:, :Q, :]
                .reshape(N, OH, W_pad, c_pad)[:, :, :OW, :Cout])
    if not nchw_output:
        return out_nhwc                 # callers chaining blocks can skip the NCHW round trip
    return jnp.transpose(out_nhwc, (0, 3, 1, 2))

    # TODO(synk): BatchNorm running_mean/running_var buffer updates are stateful side effects
    #             that do not change the forward output; not modeled here.


def _reference_forward(x_nchw, w_oihw, gamma, beta, *, stride, padding):
    """Pure-JAX reference matching PyTorch CNNBlock semantics (training mode)."""
    conv = jax.lax.conv_general_dilated(
        x_nchw.astype(jnp.float32), w_oihw.astype(jnp.float32),
        window_strides=(stride, stride),
        padding=((padding, padding), (padding, padding)),
        dimension_numbers=("NCHW", "OIHW", "NCHW"),
        precision=jax.lax.Precision.HIGHEST)
    mean = conv.mean(axis=(0, 2, 3), keepdims=True)
    var = ((conv - mean) ** 2).mean(axis=(0, 2, 3), keepdims=True)
    y = (conv - mean) / jnp.sqrt(var + BN_EPS)
    y = y * gamma.reshape(1, -1, 1, 1) + beta.reshape(1, -1, 1, 1)
    return jnp.where(y > 0.0, y, LEAKY_RELU_SLOPE * y)


if __name__ == "__main__":
    # CNNBlock(in_channels=4, out_channels=8, kernel_size=3, stride=1, padding=1)
    N, Cin, H, W = 2, 4, 16, 16
    Cout, K, stride, padding = 8, 3, 1, 1

    key = jax.random.PRNGKey(0)
    kx, kw, kg, kb = jax.random.split(key, 4)
    x = jax.random.normal(kx, (N, Cin, H, W), dtype=jnp.float32)
    conv_w = jax.random.normal(kw, (Cout, Cin, K, K), dtype=jnp.float32) * 0.1
    gamma = 1.0 + 0.1 * jax.random.normal(kg, (Cout,), dtype=jnp.float32)
    beta = 0.1 * jax.random.normal(kb, (Cout,), dtype=jnp.float32)

    ref = _reference_forward(x, conv_w, gamma, beta, stride=stride, padding=padding)

    # Run 1: f32 MXU, forced small tile -> exercises multi-tile BN accumulation + recompute
    #        pass-2 path with a tight numerical check.
    out_f32 = cnn_block_forward(x, conv_w, gamma, beta, stride=stride, padding=padding,
                                tile_rows=64, mxu_dtype=jnp.float32, store_conv=False)
    out_f32 = jax.block_until_ready(out_f32)
    assert out_f32.shape == (N, Cout, H, W), out_f32.shape
    assert jnp.allclose(out_f32, ref, atol=2e-3, rtol=2e-3), \
        float(jnp.max(jnp.abs(out_f32 - ref)))

    # Run 2: bf16 MXU, auto tiles, stored-conv-intermediate pass-2 path (deep-layer regime).
    out_bf_store = cnn_block_forward(x, conv_w, gamma, beta, stride=stride, padding=padding,
                                     mxu_dtype=jnp.bfloat16, store_conv=True)
    out_bf_store = jax.block_until_ready(out_bf_store)
    assert out_bf_store.shape == (N, Cout, H, W), out_bf_store.shape
    assert jnp.allclose(out_bf_store, ref, atol=5e-2, rtol=5e-2), \
        float(jnp.max(jnp.abs(out_bf_store - ref)))

    # Run 3: bf16 MXU, auto tiles, default (recompute) path for this shallow layer.
    out_bf = cnn_block_forward(x, conv_w, gamma, beta, stride=stride, padding=padding,
                               mxu_dtype=jnp.bfloat16)
    out_bf = jax.block_until_ready(out_bf)
    assert out_bf.shape == (N, Cout, H, W), out_bf.shape
    assert jnp.allclose(out_bf, ref, atol=5e-2, rtol=5e-2), \
        float(jnp.max(jnp.abs(out_bf - ref)))

    print("KERNEL_OK")
</pallas_src>

<mosaic_0001>
module attributes {stable_mosaic.version = 11 : i64} {
  func.func @_probe_copy_kernel(%arg0: i32, %arg1: memref<8x128xf32, #tpu.memory_space<vmem>>, %arg2: memref<8x128xf32, #tpu.memory_space<vmem>>) attributes {dimension_semantics = [#tpu.dimension_semantics<arbitrary>], iteration_bounds = array<i64: 1>, scalar_prefetch = 0 : i64, scratch_operands = 0 : i64, tpu.core_type = #tpu.core_type<tc>, window_params = [{pipeline_mode = #tpu.pipeline_mode<synchronous>, transform_indices = @transform_0, window_bounds = array<i64: 8, 128>}, {pipeline_mode = #tpu.pipeline_mode<synchronous>, transform_indices = @transform_1, window_bounds = array<i64: 8, 128>}]} {
    %c0 = arith.constant 0 : index
    %c0_0 = arith.constant 0 : index
    %0 = vector.load %arg1[%c0, %c0_0] : memref<8x128xf32, #tpu.memory_space<vmem>>, vector<8x128xf32>
    %c0_1 = arith.constant 0 : index
    %c0_2 = arith.constant 0 : index
    %1 = vector.load %arg2[%c0_1, %c0_2] : memref<8x128xf32, #tpu.memory_space<vmem>>, vector<8x128xf32>
    tpu.vector_store %arg2[%c0_1, %c0_2], %0 {strides = array<i32>} : memref<8x128xf32, #tpu.memory_space<vmem>>, vector<8x128xf32>,
    return
  }
  func.func @transform_0(%arg0: i32) -> (i32, i32) {
    %c0_i32 = arith.constant 0 : i32
    %c0_i32_0 = arith.constant 0 : i32
    %c0_i32_1 = arith.constant 0 : i32
    return %c0_i32, %c0_i32_0 : i32, i32
  }
  func.func @transform_1(%arg0: i32) -> (i32, i32) {
    %c0_i32 = arith.constant 0 : i32
    %c0_i32_0 = arith.constant 0 : i32
    %c0_i32_1 = arith.constant 0 : i32
    return %c0_i32, %c0_i32_0 : i32, i32
  }
}

module attributes {stable_mosaic.version = 11 : i64} {
  func.func @_stats_kernel(%arg0: i32, %arg1: i32, %arg2: memref<384x8xf32, #tpu.memory_space<vmem>>, %arg3: memref<72x128xf32, #tpu.memory_space<vmem>>, %arg4: memref<64x1xf32, #tpu.memory_space<vmem>>, %arg5: memref<1x1x128xf32, #tpu.memory_space<vmem>>, %arg6: memref<1x1x128xf32, #tpu.memory_space<vmem>>, %arg7: memref<64x72xf32, #tpu.memory_space<vmem>>) attributes {dimension_semantics = [#tpu.dimension_semantics<parallel>, #tpu.dimension_semantics<arbitrary>], iteration_bounds = array<i64: 2, 5>, scalar_prefetch = 0 : i64, scratch_operands = 1 : i64, tpu.core_type = #tpu.core_type<tc>, window_params = [{transform_indices = @transform_0, window_bounds = array<i64: 384, 8>}, {pipeline_mode = #tpu.pipeline_mode<synchronous>, transform_indices = @transform_1, window_bounds = array<i64: 72, 128>}, {transform_indices = @transform_2, window_bounds = array<i64: 64, 1>}, {transform_indices = @transform_3, window_bounds = array<i64: 1, 1, 128>}, {transform_indices = @transform_4, window_bounds = array<i64: 1, 1, 128>}]} {
    %c0_i32 = arith.constant 0 : i32
    %0 = arith.cmpi eq, %arg1, %c0_i32 : i32
    %1 = arith.extui %0 : i1 to i32
    %c0_i32_0 = arith.constant 0 : i32
    %2 = arith.cmpi ne, %1, %c0_i32_0 : i32
    scf.if %2 {
      %cst_49 = arith.constant 0.000000e+00 : f32
      %68 = vector.broadcast %cst_49 : f32 to vector<1x1x128xf32>
      %c0_50 = arith.constant 0 : index
      %c0_51 = arith.constant 0 : index
      %c0_52 = arith.constant 0 : index
      %69 = vector.load %arg5[%c0_50, %c0_51, %c0_52] : memref<1x1x128xf32, #tpu.memory_space<vmem>>, vector<1x1x128xf32>
      tpu.vector_store %arg5[%c0_50, %c0_51, %c0_52], %68 {strides = array<i32>} : memref<1x1x128xf32, #tpu.memory_space<vmem>>, vector<1x1x128xf32>,
      %cst_53 = arith.constant 0.000000e+00 : f32
      %70 = vector.broadcast %cst_53 : f32 to vector<1x1x128xf32>
      %c0_54 = arith.constant 0 : index
      %c0_55 = arith.constant 0 : index
      %c0_56 = arith.constant 0 : index
      %71 = vector.load %arg6[%c0_54, %c0_55, %c0_56] : memref<1x1x128xf32, #tpu.memory_space<vmem>>, vector<1x1x128xf32>
      tpu.vector_store %arg6[%c0_54, %c0_55, %c0_56], %70 {strides = array<i32>} : memref<1x1x128xf32, #tpu.memory_space<vmem>>, vector<1x1x128xf32>,
    } else {
    }
    %c64_i32 = arith.constant 64 : i32
    %3 = arith.muli %arg1, %c64_i32 : i32
    %c1_i32 = arith.constant 1 : i32
    %4 = arith.muli %c1_i32, %3 : i32
    %c0_i32_1 = arith.constant 0 : i32
    %5 = arith.addi %4, %c0_i32_1 : i32
    %6 = arith.index_cast %5 : i32 to index
    %c0 = arith.constant 0 : index
    %7 = vector.load %arg2[%6, %c0] : memref<384x8xf32, #tpu.memory_space<vmem>>, vector<64x8xf32>
    %c0_2 = arith.constant 0 : index
    %c0_3 = arith.constant 0 : index
    %8 = vector.load %arg7[%c0_2, %c0_3] : memref<64x72xf32, #tpu.memory_space<vmem>>, vector<64x8xf32>
    tpu.vector_store %arg7[%c0_2, %c0_3], %7 {strides = array<i32>} : memref<64x72xf32, #tpu.memory_space<vmem>>, vector<64x8xf32>,
    %c1_i32_4 = arith.constant 1 : i32
    %9 = arith.muli %c1_i32_4, %3 : i32
    %c1_i32_5 = arith.constant 1 : i32
    %10 = arith.addi %9, %c1_i32_5 : i32
    %11 = arith.index_cast %10 : i32 to index
    %c0_6 = arith.constant 0 : index
    %12 = vector.load %arg2[%11, %c0_6] : memref<384x8xf32, #tpu.memory_space<vmem>>, vector<64x8xf32>
    %c0_7 = arith.constant 0 : index
    %c8 = arith.constant 8 : index
    %13 = vector.load %arg7[%c0_7, %c8] : memref<64x72xf32, #tpu.memory_space<vmem>>, vector<64x8xf32>
    tpu.vector_store %arg7[%c0_7, %c8], %12 {strides = array<i32>} : memref<64x72xf32, #tpu.memory_space<vmem>>, vector<64x8xf32>,
    %c1_i32_8 = arith.constant 1 : i32
    %14 = arith.muli %c1_i32_8, %3 : i32
    %c2_i32 = arith.constant 2 : i32
    %15 = arith.addi %14, %c2_i32 : i32
    %16 = arith.index_cast %15 : i32 to index
    %c0_9 = arith.constant 0 : index
    %17 = vector.load %arg2[%16, %c0_9] : memref<384x8xf32, #tpu.memory_space<vmem>>, vector<64x8xf32>
    %c0_10 = arith.constant 0 : index
    %c16 = arith.constant 16 : index
    %18 = vector.load %arg7[%c0_10, %c16] : memref<64x72xf32, #tpu.memory_space<vmem>>, vector<64x8xf32>
    tpu.vector_store %arg7[%c0_10, %c16], %17 {strides = array<i32>} : memref<64x72xf32, #tpu.memory_space<vmem>>, vector<64x8xf32>,
    %c1_i32_11 = arith.constant 1 : i32
    %19 = arith.muli %c1_i32_11, %3 : i32
    %c18_i32 = arith.constant 18 : i32
    %20 = arith.addi %19, %c18_i32 : i32
    %21 = arith.index_cast %20 : i32 to index
    %c0_12 = arith.constant 0 : index
    %22 = vector.load %arg2[%21, %c0_12] : memref<384x8xf32, #tpu.memory_space<vmem>>, vector<64x8xf32>
    %c0_13 = arith.constant 0 : index
    %c24 = arith.constant 24 : index
    %23 = vector.load %arg7[%c0_13, %c24] : memref<64x72xf32, #tpu.memory_space<vmem>>, vector<64x8xf32>
    tpu.vector_store %arg7[%c0_13, %c24], %22 {strides = array<i32>} : memref<64x72xf32, #tpu.memory_space<vmem>>, vector<64x8xf32>,
    %c1_i32_14 = arith.constant 1 : i32
    %24 = arith.muli %c1_i32_14, %3 : i32
    %c19_i32 = arith.constant 19 : i32
    %25 = arith.addi %24, %c19_i32 : i32
    %26 = arith.index_cast %25 : i32 to index
    %c0_15 = arith.constant 0 : index
    %27 = vector.load %arg2[%26, %c0_15] : memref<384x8xf32, #tpu.memory_space<vmem>>, vector<64x8xf32>
    %c0_16 = arith.constant 0 : index
    %c32 = arith.constant 32 : index
    %28 = vector.load %arg7[%c0_16, %c32] : memref<64x72xf32, #tpu.memory_space<vmem>>, vector<64x8xf32>
    tpu.vector_store %arg7[%c0_16, %c32], %27 {strides = array<i32>} : memref<64x72xf32, #tpu.memory_space<vmem>>, vector<64x8xf32>,
    %c1_i32_17 = arith.constant 1 : i32
    %29 = arith.muli %c1_i32_17, %3 : i32
    %c20_i32 = arith.constant 20 : i32
    %30 = arith.addi %29, %c20_i32 : i32
    %31 = arith.index_cast %30 : i32 to index
    %c0_18 = arith.constant 0 : index
    %32 = vector.load %arg2[%31, %c0_18] : memref<384x8xf32, #tpu.memory_space<vmem>>, vector<64x8xf32>
    %c0_19 = arith.constant 0 : index
    %c40 = arith.constant 40 : index
    %33 = vector.load %arg7[%c0_19, %c40] : memref<64x72xf32, #tpu.memory_space<vmem>>, vector<64x8xf32>
    tpu.vector_store %arg7[%c0_19, %c40], %32 {strides = array<i32>} : memref<64x72xf32, #tpu.memory_space<vmem>>, vector<64x8xf32>,
    %c1_i32_20 = arith.constant 1 : i32
    %34 = arith.muli %c1_i32_20, %3 : i32
    %c36_i32 = arith.constant 36 : i32
    %35 = arith.addi %34, %c36_i32 : i32
    %36 = arith.index_cast %35 : i32 to index
    %c0_21 = arith.constant 0 : index
    %37 = vector.load %arg2[%36, %c0_21] : memref<384x8xf32, #tpu.memory_space<vmem>>, vector<64x8xf32>
    %c0_22 = arith.constant 0 : index
    %c48 = arith.constant 48 : index
    %38 = vector.load %arg7[%c0_22, %c48] : memref<64x72xf32, #tpu.memory_space<vmem>>, vector<64x8xf32>
    tpu.vector_store %arg7[%c0_22, %c48], %37 {strides = array<i32>} : memref<64x72xf32, #tpu.memory_space<vmem>>, vector<64x8xf32>,
    %c1_i32_23 = arith.constant 1 : i32
    %39 = arith.muli %c1_i32_23, %3 : i32
    %c37_i32 = arith.constant 37 : i32
    %40 = arith.addi %39, %c37_i32 : i32
    %41 = arith.index_cast %40 : i32 to index
    %c0_24 = arith.constant 0 : index
    %42 = vector.load %arg2[%41, %c0_24] : memref<384x8xf32, #tpu.memory_space<vmem>>, vector<64x8xf32>
    %c0_25 = arith.constant 0 : index
    %c56 = arith.constant 56 : index
    %43 = vector.load %arg7[%c0_25, %c56] : memref<64x72xf32, #tpu.memory_space<vmem>>, vector<64x8xf32>
    tpu.vector_store %arg7[%c0_25, %c56], %42 {strides = array<i32>} : memref<64x72xf32, #tpu.memory_space<vmem>>, vector<64x8xf32>,
    %c1_i32_26 = arith.constant 1 : i32
    %44 = arith.muli %c1_i32_26, %3 : i32
    %c38_i32 = arith.constant 38 : i32
    %45 = arith.addi %44, %c38_i32 : i32
    %46 = arith.index_cast %45 : i32 to index
    %c0_27 = arith.constant 0 : index
    %47 = vector.load %arg2[%46, %c0_27] : memref<384x8xf32, #tpu.memory_space<vmem>>, vector<64x8xf32>
    %c0_28 = arith.constant 0 : index
    %c64 = arith.constant 64 : index
    %48 = vector.load %arg7[%c0_28, %c64] : memref<64x72xf32, #tpu.memory_space<vmem>>, vector<64x8xf32>
    tpu.vector_store %arg7[%c0_28, %c64], %47 {strides = array<i32>} : memref<64x72xf32, #tpu.memory_space<vmem>>, vector<64x8xf32>,
    %c0_29 = arith.constant 0 : index
    %c0_30 = arith.constant 0 : index
    %49 = vector.load %arg7[%c0_29, %c0_30] : memref<64x72xf32, #tpu.memory_space<vmem>>, vector<64x72xf32>
    %c0_31 = arith.constant 0 : index
    %c0_32 = arith.constant 0 : index
    %50 = vector.load %arg3[%c0_31, %c0_32] : memref<72x128xf32, #tpu.memory_space<vmem>>, vector<72x128xf32>
    %cst = arith.constant dense<0.000000e+00> : vector<64x128xf32>
    %51 = tpu.matmul %49, %50, %cst {dimension_numbers = #tpu.dot_dimension_numbers<[1], [0], [0], [1], [0, 0, 1, 1], [], []>} : vector<64x72xf32>, vector<72x128xf32>, vector<64x128xf32> -> vector<64x128xf32>
    %c0_33 = arith.constant 0 : index
    %c0_34 = arith.constant 0 : index
    %52 = vector.load %arg4[%c0_33, %c0_34] : memref<64x1xf32, #tpu.memory_space<vmem>>, vector<64x1xf32>
    %53 = vector.broadcast %52 : vector<64x1xf32> to vector<64x128xf32>
    %54 = arith.mulf %51, %53 : vector<64x128xf32>
    %c0_35 = arith.constant 0 : index
    %c0_36 = arith.constant 0 : index
    %c0_37 = arith.constant 0 : index
    %55 = vector.load %arg5[%c0_35, %c0_36, %c0_37] : memref<1x1x128xf32, #tpu.memory_space<vmem>>, vector<1x1x128xf32>
    %cst_38 = arith.constant dense<0.000000e+00> : vector<128xf32>
    %56 = vector.multi_reduction <add>, %54, %cst_38 [0] : vector<64x128xf32> to vector<128xf32>
    %57 = vector.shape_cast %56 : vector<128xf32> to vector<1x128xf32>
    %58 = vector.shape_cast %57 : vector<1x128xf32> to vector<1x1x128xf32>
    %59 = arith.addf %55, %58 : vector<1x1x128xf32>
    %c0_39 = arith.constant 0 : index
    %c0_40 = arith.constant 0 : index
    %c0_41 = arith.constant 0 : index
    %60 = vector.load %arg5[%c0_39, %c0_40, %c0_41] : memref<1x1x128xf32, #tpu.memory_space<vmem>>, vector<1x1x128xf32>
    tpu.vector_store %arg5[%c0_39, %c0_40, %c0_41], %59 {strides = array<i32>} : memref<1x1x128xf32, #tpu.memory_space<vmem>>, vector<1x1x128xf32>,
    %c0_42 = arith.constant 0 : index
    %c0_43 = arith.constant 0 : index
    %c0_44 = arith.constant 0 : index
    %61 = vector.load %arg6[%c0_42, %c0_43, %c0_44] : memref<1x1x128xf32, #tpu.memory_space<vmem>>, vector<1x1x128xf32>
    %62 = arith.mulf %54, %51 : vector<64x128xf32>
    %cst_45 = arith.constant dense<0.000000e+00> : vector<128xf32>
    %63 = vector.multi_reduction <add>, %62, %cst_45 [0] : vector<64x128xf32> to vector<128xf32>
    %64 = vector.shape_cast %63 : vector<128xf32> to vector<1x128xf32>
    %65 = vector.shape_cast %64 : vector<1x128xf32> to vector<1x1x128xf32>
    %66 = arith.addf %61, %65 : vector<1x1x128xf32>
    %c0_46 = arith.constant 0 : index
    %c0_47 = arith.constant 0 : index
    %c0_48 = arith.constant 0 : index
    %67 = vector.load %arg6[%c0_46, %c0_47, %c0_48] : memref<1x1x128xf32, #tpu.memory_space<vmem>>, vector<1x1x128xf32>
    tpu.vector_store %arg6[%c0_46, %c0_47, %c0_48], %66 {strides = array<i32>} : memref<1x1x128xf32, #tpu.memory_space<vmem>>, vector<1x1x128xf32>,
    return
  }
  func.func @transform_0(%arg0: i32, %arg1: i32) -> (i32, i32) {
    %c0_i32 = arith.constant 0 : i32
    %c0_i32_0 = arith.constant 0 : i32
    return %arg0, %c0_i32 : i32, i32
  }
  func.func @transform_1(%arg0: i32, %arg1: i32) -> (i32, i32) {
    %c0_i32 = arith.constant 0 : i32
    %c0_i32_0 = arith.constant 0 : i32
    %c0_i32_1 = arith.constant 0 : i32
    return %c0_i32, %c0_i32_0 : i32, i32
  }
  func.func @transform_2(%arg0: i32, %arg1: i32) -> (i32, i32) {
    %c0_i32 = arith.constant 0 : i32
    %c0_i32_0 = arith.constant 0 : i32
    return %arg1, %c0_i32 : i32, i32
  }
  func.func @transform_3(%arg0: i32, %arg1: i32) -> (i32, i32, i32) {
    %c0_i32 = arith.constant 0 : i32
    %c0_i32_0 = arith.constant 0 : i32
    %c0_i32_1 = arith.constant 0 : i32
    return %arg0, %c0_i32, %c0_i32_0 : i32, i32, i32
  }
  func.func @transform_4(%arg0: i32, %arg1: i32) -> (i32, i32, i32) {
    %c0_i32 = arith.constant 0 : i32
    %c0_i32_0 = arith.constant 0 : i32
    %c0_i32_1 = arith.constant 0 : i32
    return %arg0, %c0_i32, %c0_i32_0 : i32, i32, i32
  }
}

</mosaic_0001>

<bundles_post_ra>
// kernel: tpu_custom_call.1
= control target key start
LH: loop header
LB: loop body
LE: loop exit
PB: predicated region body
PF: predicated region fallthrough
CT: control target
= control target key end

     0   :  { %6 = vsyncpa [#allocation3], 0  ;;  %s124_s0 = inlined_call_operand.hbm [shape: f32[8,128], index: 0, kind: input, shape index: {}]   ;;  %s125_s1 = inlined_call_operand.hbm [shape: f32[8,128], index: 1, kind: output, shape index: {}]  }
   0x1   :  { %7 = vsyncpa [#allocation4], 0  ;;  %s88_s6 = smov [#allocation2]   ;;  %s40_s10 = scalar_lea.hbm %s124_s0, 128 }
   0x2   :  { %s14_s7 = sshll.u32 %s88_s6, 4  ;;  %p41_p0 = scmp.ne.s32.totalorder %s124_s0, %s40_s10  ;;  %s15_s7 = int_to_ptr.vmem [resolvable:$true] %s14_s7 }
   0x3   :  { %p44_p1 = scmp.lt.u32.totalorder %s40_s10, %s124_s0 }
   0x5   :  { %p46_p2 = pnand %p44_p1, %p41_p0 }
   0x7   :  { %49 = shalt.err (!%p46_p2)
}
   0x8   :  { %s50_s15 = scalar_lea.vmem %s15_s7, 128  ;;  %p55_p4 = scmp.lt.s32.totalorder %s15_s7, %s15_s7 }
   0x9   :  { %p51_p3 = scmp.ne.s32.totalorder %s15_s7, %s50_s15  ;;  %p56_p5 = scmp.lt.s32.totalorder %s50_s15, %s50_s15 }
   0xb   :  { %p57_p6 = por %p56_p5, %p55_p4 }
   0xd   :  { %p58_p7 = pnand %p57_p6, %p51_p3 }
   0xf   :  { %61 = shalt.err (!%p58_p7)
}
  0x10   :  { %17 = dma.hbm_to_vmem [thread:$0]  %s124_s0, 128, %s15_s7, [#allocation3]  }
  0x11   :  { %84 = dma.done.wait [#allocation3], 128  }
  0x12   :  { %85 = vsyncadd [#allocation3], 4294967168  ;;  %s89_s18 = smov [#allocation5]   ;;  %v21_v0 = vld [vmem:[#allocation2] sm:$0xff] }
  0x13   :  { %s29_s19 = sshll.u32 %s89_s18, 4  ;;  %22 = vst [vmem:[#allocation5] sm:$0xff] %v21_v0  ;;  %s30_s19 = int_to_ptr.vmem [resolvable:$true] %s29_s19 }
  0x14   :  { %s62_s20 = scalar_lea.vmem %s30_s19, 128  ;;  %p67_p9 = scmp.lt.s32.totalorder %s30_s19, %s30_s19 }
  0x15   :  { %p63_p8 = scmp.ne.s32.totalorder %s30_s19, %s62_s20  ;;  %p68_p10 = scmp.lt.s32.totalorder %s62_s20, %s62_s20 }
  0x17   :  { %p69_p11 = por %p68_p10, %p67_p9 }
  0x19   :  { %p70_p12 = pnand %p69_p11, %p63_p8 }
  0x1b   :  { %73 = shalt.err (!%p70_p12)
}
  0x1c   :  { %s74_s23 = scalar_lea.hbm %s125_s1, 128 }
  0x1d   :  { %p75_p13 = scmp.ne.s32.totalorder %s125_s1, %s74_s23  ;;  %p78_p0 = scmp.lt.u32.totalorder %s74_s23, %s125_s1 }
  0x1f   :  { %p80_p1 = pnand %p78_p0, %p75_p13 }
  0x21   :  { %83 = shalt.err (!%p80_p1)
}
  0x22   :  { %32 = dma.vmem_to_hbm [thread:$0]  %s30_s19, 128, %s125_s1, [#allocation4]  }
  0x23   :  { %86 = dma.done.wait [#allocation4], 128  }
  0x24   :  { %87 = vsyncadd [#allocation4], 4294967168 }
  0x25   :  { %36 = vsyncpa [#allocation3], 1 }
  0x26   :  { %37 = vsyncpa [#allocation4], 1 }

// kernel: tpu_custom_call.1
= control target key start
LH: loop header
LB: loop body
LE: loop exit
PB: predicated region body
PF: predicated region fallthrough
CT: control target
= control target key end

     0   :  { %10 = vsyncpa [#allocation4], 0  ;;  %s1929_s0 = inlined_call_operand.vmem [shape: f32[768,8], index: 0, kind: input, shape index: {}]   ;;  %s1930_s1 = inlined_call_operand.vmem [shape: f32[72,128], index: 1, kind: input, shape index: {}]   ;;  %s1931_s2 = inlined_call_operand.vmem [shape: f32[320,1], index: 2, kind: input, shape index: {}]   ;;  %s1932_s3 = inlined_call_operand.hbm [shape: f32[2,1,128], index: 3, kind: output, shape index: {0}]   ;;  %s1933_s4 = inlined_call_operand.hbm [shape: f32[2,1,128], index: 4, kind: output, shape index: {1}]  }
   0x1   :  { %12 = vsyncpa [#allocation4 + $0x1], 0 }
   0x2   :  { %13 = vsyncpa [#allocation6], 0 }
   0x3   :  { %15 = vsyncpa [#allocation6 + $0x1], 0  ;;  %s1499_s15 = smov 0   ;;  %s1501_s16 = smov 0  }
   0x4   :  { %s1503_s17 = smov 0   ;;  %s1505_s18 = smov 0  }
   0x5   :  { %s1507_s19 = smov 0   ;;  %s1509_s20 = smov 0  }
   0x6   :  { %s1511_s21 = smov 0   ;;  %s1513_s22 = smov 0  }
   0x7 LB: > { %s1079_s23 = sadd.s32 4294967295, %s1460_s22   ;;  %s1080_s24 = sadd.s32 4294967294, %s1460_s22   ;;  %s1460_s22 = sphi %s1513_s22, %s21_s22   ;;  %s1456_s21 = sphi %s1511_s21, %s1951_s21   ;;  %s1452_s20 = sphi %s1509_s20, %s1950_s20   ;;  %s1448_s19 = sphi %s1507_s19, %s1949_s19   ;;  %s1444_s18 = sphi %s1505_s18, %s1948_s18   ;;  %s1440_s17 = sphi %s1503_s17, %s1947_s17   ;;  %s1436_s16 = sphi %s1501_s16, %s1946_s16   ;;  %s1432_s15 = sphi %s1499_s15, %s1945_s15  }
   0x8   : > { %s30_s25 = sadd.s32 1, %s1452_s20  ;;  %s33_s26 = sadd.s32 1, %s1456_s21 }
   0x9   : > { %p31_p0 = scmp.ge.s32.totalorder %s30_s25, 5  ;;  %p123_p1 = scmp.ne.s32.totalorder %s1440_s17, %s1436_s16 }
   0xa   : > { %p124_p2 = scmp.eq.s32.totalorder %s1079_s23, 9  ;;  %p129_p4 = scmp.ne.s32.totalorder %s1436_s16, %s1432_s15 }
   0xb   : > { %s1953_s25 = smov (%p31_p0, %s30_s25), 0  ;;  %s1955_s26 = smov (!%p31_p0, %s33_s26), %s1456_s21 }
   0xc   : > { %p1548_p3 = por %p124_p2, %p123_p1  ;;  %p35_p5 = scmp.ge.s32.totalorder %s1955_s26, 2 }
   0xd   : > { %p130_p6 = scmp.eq.s32.totalorder %s1080_s24, 9  ;;  %p1083_p7 = scmp.ge.s32.totalorder %s1460_s22, 1 }
   0xe   : > { %p195_p8 = scmp.lt.s32.totalorder %s1460_s22, 11  ;;  %s1957_s26 = smov (%p35_p5, %s1955_s26), 0 }
   0xf   : > { %p1558_p9 = por %p130_p6, %p129_p4  ;;  %s110_s29 = ssub.s32 %s1456_s21, %s1957_s26 }
  0x10   : > { %p196_p10 = pnand %p1083_p7, %p195_p8  ;;  %s113_s30 = sadd.s32 1, %s1440_s17 }
  0x11   : > { %p111_p11 = scmp.eq.s32.totalorder %s110_s29, 0  ;;  %s1569_s6 = sand.u32 (!%p196_p10), 1, %s1436_s16  }
  0x12   : > { %199 = sbr.rel (%p196_p10) target bundleno = 557 (0x22d), region = 32  ;;  %s1085_s8 = sshll.u32 (!%p196_p10), %s1444_s18, 3 }
  0x13   : > { %s1566_s5 = scalar_select %p111_p11, %s1440_s17, %s113_s30  }
  0x14   : > { %s229_s7 = smul.u32 (!%p196_p10), 48, %s1448_s19  ;;  %p236_p13 = scmp.lt.s32.totalorder (!%p196_p10), %s1085_s8, 39 }
  0x15   : > { %s1582_s29 = scalar_lea.vmem (!%p196_p10), [#allocation3], %s1569_s6  ;;  %s1585_s30 = scalar_lea.vmem (!%p196_p10), [#allocation5], %s1569_s6 }
  0x16   : > { %p230_p12 = scmp.lt.s32.totalorder (!%p196_p10), %s229_s7, 95  ;;  %p1087_p0 = scmp.ne.s32.totalorder (!%p196_p10), %s1444_s18, 0 }
  0x19   : > { %s1959_s7 = smov (!%p230_p12, %s229_s7), 95  ;;  %s1961_s8 = smov (!%p236_p13, %s1085_s8), 39 }
  0x1a   : > { %s1084_s9 = sshll.u32 %s1959_s7, 3  ;;  %s1086_s13 = sshll.u32 %s1961_s8, 3  ;;  %v1462_v0 = vmov (!%p1087_p0), 0.0  }
  0x1b   : > { %s233_s12 = scalar_lea.vmem %s1929_s0, %s1084_s9  ;;  %s1579_s24 = scalar_lea.vmem %s1931_s2, %s1086_s13  ;;  %245 = vst [vmem:[%s1582_s29] sm:$0x1] (!%p1087_p0), %v1462_v0  ;;  %246 = vst [vmem:[%s1585_s30] sm:$0x1] (!%p1087_p0), %v1462_v0 }
  0x1c   : > { %244 = sbr.rel (%p1087_p0) target bundleno = 35 (0x23), region = 36 }
  0x23 PF: > { %s1088_s7 = sshll.u32 %s1444_s18, 6  ;;  %s1936_s9 = smov 16   ;;  %vm257_vm0 = vcmask 64512   ;;  %v682_v18 = vld [vmem:[%s1930_s1] sm:$0xff]  ;;  %v683_v19 = vld [vmem:[%s1930_s1 + $0x8] sm:$0xff]  ;;  %v684_v22 = vld [vmem:[%s1930_s1 + $0x10] sm:$0xff] }
  0x24   : > { %s1591_s8 = scalar_lea.vmem %s233_s12, %s1088_s7  ;;  %s1464_s10 = smov 8   ;;  %v1220_v20 = vpack.c.bf16 %v683_v19, %v682_v18  ;;  %v685_v23 = vld [vmem:[%s1930_s1 + $0x18] sm:$0xff]  ;;  %v686_v28 = vld [vmem:[%s1930_s1 + $0x20] sm:$0xff]  ;;  %v687_v29 = vld [vmem:[%s1930_s1 + $0x28] sm:$0xff]  ;;  %vm308_vm1 = vcmask 130112   ;;  %vm359_vm2 = vcmask 195712  }
  0x25   : > { %v1099_v1 = vld [vmem:[%s1591_s8 + $0x2] sm:$0xff]  ;;  %v1100_v3 = vld [vmem:[%s1591_s8 + $0xa] sm:$0xff]  ;;  %v1109_v5 = vld [vmem:[%s1591_s8 + $0x1a] sm:$0xff]  ;;  %s1465_s18 = smov 24   ;;  %s1934_s11 = smov 32   ;;  %v1224_v24 = vpack.c.bf16 %v685_v23, %v684_v22  ;;  %v1228_v30 = vpack.c.bf16 %v687_v29, %v686_v28  ;;  %vm410_vm3 = vcmask 261312  }
  0x26   : > { %v1090_v2 = vld [vmem:[%s1591_s8 + $0x1] sm:$0xff]  ;;  %335 = vrot.lane.b32.xlu1 %v1099_v1, %s1936_s9  ;;  %v1091_v4 = vld [vmem:[%s1591_s8 + $0x9] sm:$0xff]  ;;  %v1108_v6 = vld [vmem:[%s1591_s8 + $0x12] sm:$0xff]  ;;  %s1938_s12 = smov 40   ;;  %1221 = vmatprep.subr.bf16.mxu0 %v1220_v20  ;;  %s1470_s23 = smov 64   ;;  %vm461_vm4 = vcmask 326912  }
  0x27   : > { %284 = vrot.lane.b32.xlu0 %v1090_v2, %s1464_s10  ;;  %v1092_v7 = vld [vmem:[%s1591_s8 + $0x11] sm:$0xff]  ;;  %v1118_v10 = vld [vmem:[%s1591_s8 + $0x1b] sm:$0xff]  ;;  %v250_v13 = vld [vmem:[%s1591_s8 + $0x8] sm:$0xff]  ;;  %1236 = vmatprep.subr.bf16.mxu1 %v1220_v20  ;;  %s1943_s7 = smov 40   ;;  %s1944_s13 = smov 16   ;;  %vm512_vm5 = vcmask 392512  }
  0x28   : > { %v1117_v8 = vld [vmem:[%s1591_s8 + $0x13] sm:$0xff]  ;;  %v249_v11 = vld [vmem:[%s1591_s8] sm:$0xff]  ;;  %259 = vst.msk [vmem:[#allocation2 + $0x8] sm:$0xff] %vm257_vm0, %v250_v13  ;;  %1223 = vmatpush3.bf16.msra.mxu0 %v1220_v20  ;;  %1241 = vmatpush3.bf16.msra.mxu1 %v1220_v20  ;;  %v1111_v32 = vld [vmem:[%s1591_s8 + $0x2a] sm:$0xff]  ;;  %vm563_vm6 = vcmask 458112   ;;  %vm614_vm7 = vcmask 523712  }
  0x29   : > { %v1126_v9 = vld [vmem:[%s1591_s8 + $0x14] sm:$0xff]  ;;  %258 = vst.msk [vmem:[#allocation2] sm:$0xff] %vm257_vm0, %v249_v11  ;;  %v1625_v16 = vld [vmem:[%s1591_s8 + $0x24] sm:$0xff]  ;;  %v1127_v17 = vld [vmem:[%s1591_s8 + $0x1c] sm:$0xff]  ;;  %1225 = vmatprep.subr.bf16.mxu0 %v1224_v24  ;;  %1237 = vmatprep.subr.bf16.mxu1 %v1224_v24  ;;  %vm665_vm8 = vcmask 589312   ;;  %vm691_vm9 = vcmask 588800  }
  0x2a   : > { %337 = vrot.lane.b32.xlu1 %v1100_v3, %s1936_s9  ;;  %v1093_v12 = vld [vmem:[%s1591_s8 + $0x19] sm:$0xff]  ;;  %v251_v14 = vld [vmem:[%s1591_s8 + $0x10] sm:$0xff]  ;;  %v1110_v21 = vld [vmem:[%s1591_s8 + $0x22] sm:$0xff] }
  0x2b   : > { %286 = vrot.lane.b32.xlu0 %v1091_v4, %s1464_s10  ;;  %260 = vst.msk [vmem:[#allocation2 + $0x10] sm:$0xff] %vm257_vm0, %v251_v14  ;;  %v252_v15 = vld [vmem:[%s1591_s8 + $0x18] sm:$0xff]  ;;  %v1144_v25 = vld [vmem:[%s1591_s8 + $0x25] sm:$0xff]  ;;  %v688_v33 = vld [vmem:[%s1930_s1 + $0x30] sm:$0xff]  ;;  %v1471_v14 = vmov 0  }
  0x2c   : > { %261 = vst.msk [vmem:[#allocation2 + $0x18] sm:$0xff] %vm257_vm0, %v252_v15  ;;  %v1136_v26 = vld [vmem:[%s1591_s8 + $0x2c] sm:$0xff]  ;;  %v253_v27 = vld [vmem:[%s1591_s8 + $0x20] sm:$0xff]  ;;  %1227 = vmatpush3.bf16.msra.mxu0 %v1224_v24  ;;  %1242 = vmatpush3.bf16.msra.mxu1 %v1224_v24  ;;  %v689_v34 = vld [vmem:[%s1930_s1 + $0x38] sm:$0xff] }
  0x2d   : > { %262 = vst.msk [vmem:[#allocation2 + $0x20] sm:$0xff] %vm257_vm0, %v253_v27  ;;  %v1119_v31 = vld [vmem:[%s1591_s8 + $0x23] sm:$0xff]  ;;  %1229 = vmatprep.subr.bf16.mxu0 %v1228_v30  ;;  %1238 = vmatprep.subr.bf16.mxu1 %v1228_v30  ;;  %v1232_v35 = vpack.c.bf16 %v689_v34, %v688_v33  ;;  %v1145_v37 = vld [vmem:[%s1591_s8 + $0x2d] sm:$0xff]  ;;  %v1146_v46 = vld [vmem:[%s1591_s8 + $0x35] sm:$0xff] }
  0x2e   : > { %388 = vrot.lane.b32.xlu1 %v1109_v5, %s1465_s18  ;;  %v1153_v36 = vld [vmem:[%s1591_s8 + $0x26] sm:$0xff]  ;;  %v1154_v42 = vld [vmem:[%s1591_s8 + $0x2e] sm:$0xff]  ;;  %v1138_v47 = vld [vmem:[%s1591_s8 + $0x3c] sm:$0xff]  ;;  %1332 = vset.pattern.permute.xlu0 %v1471_v14 }
  0x2f   : > { %386 = vrot.lane.b32.xlu0 %v1108_v6, %s1465_s18  ;;  %v254_v38 = vld [vmem:[%s1591_s8 + $0x28] sm:$0xff]  ;;  %v690_v39 = vld [vmem:[%s1930_s1 + $0x40] sm:$0xff]  ;;  %v1137_v44 = vld [vmem:[%s1591_s8 + $0x34] sm:$0xff]  ;;  %1333 = vset.pattern.permute.xlu1 %v1471_v14 }
  0x30   : > { %1231 = vmatpush3.bf16.msra.mxu0 %v1228_v30  ;;  %1243 = vmatpush3.bf16.msra.mxu1 %v1228_v30  ;;  %263 = vst.msk [vmem:[#allocation2 + $0x28] sm:$0xff] %vm257_vm0, %v254_v38  ;;  %v1120_v40 = vld [vmem:[%s1591_s8 + $0x2b] sm:$0xff]  ;;  %v1094_v41 = vld [vmem:[%s1591_s8 + $0x21] sm:$0xff]  ;;  %v1121_v49 = vld [vmem:[%s1591_s8 + $0x33] sm:$0xff] }
  0x31   : > { %1233 = vmatprep.subr.bf16.mxu0 %v1232_v35  ;;  %1239 = vmatprep.subr.bf16.mxu1 %v1232_v35  ;;  %v1095_v43 = vld [vmem:[%s1591_s8 + $0x29] sm:$0xff]  ;;  %v1112_v45 = vld [vmem:[%s1591_s8 + $0x32] sm:$0xff]  ;;  %v1113_v50 = vld [vmem:[%s1591_s8 + $0x3a] sm:$0xff] }
  0x32   : > { %288 = vrot.lane.b32.xlu1 %v1092_v7, %s1464_s10  ;;  %v255_v48 = vld [vmem:[%s1591_s8 + $0x30] sm:$0xff]  ;;  %v1147_v52 = vld [vmem:[%s1591_s8 + $0x3d] sm:$0xff]  ;;  %v1148_v61 = vld [vmem:[%s1591_s8 + $0x45] sm:$0xff] }
  0x33   : > { %437 = vrot.lane.b32.xlu0 %v1117_v8, %s1934_s11  ;;  %264 = vst.msk [vmem:[#allocation2 + $0x30] sm:$0xff] %vm257_vm0, %v255_v48  ;;  %v1155_v51 = vld [vmem:[%s1591_s8 + $0x36] sm:$0xff]  ;;  %v1156_v56 = vld [vmem:[%s1591_s8 + $0x3e] sm:$0xff]  ;;  %v1140_v60 = vld [vmem:[%s1591_s8 + $0x4c] sm:$0xff] }
  0x34   : > { %1235 = vmatpush3.bf16.msra.mxu0 %v1232_v35  ;;  %1244 = vmatpush3.bf16.msra.mxu1 %v1232_v35  ;;  %v256_v53 = vld [vmem:[%s1591_s8 + $0x38] sm:$0xff]  ;;  %v1139_v58 = vld [vmem:[%s1591_s8 + $0x44] sm:$0xff]  ;;  %v1149_v0 = vld [vmem:[%s1591_s8 + $0x4d] sm:$0xff] }
  0x35   : > { %1206 = vmatprep.subr.mxu0 %v690_v39  ;;  %1240 = vmatprep.subr.mxu1 %v690_v39  ;;  %265 = vst.msk [vmem:[#allocation2 + $0x38] sm:$0xff] %vm257_vm0, %v256_v53  ;;  %v1122_v54 = vld [vmem:[%s1591_s8 + $0x3b] sm:$0xff]  ;;  %v1096_v55 = vld [vmem:[%s1591_s8 + $0x31] sm:$0xff]  ;;  %v1123_v63 = vld [vmem:[%s1591_s8 + $0x43] sm:$0xff] }
  0x36   : > { %488 = vrot.lane.b32.xlu1 %v1126_v9, %s1938_s12  ;;  %v1097_v57 = vld [vmem:[%s1591_s8 + $0x39] sm:$0xff]  ;;  %v1114_v59 = vld [vmem:[%s1591_s8 + $0x42] sm:$0xff]  ;;  %v1115_v62 = vld [vmem:[%s1591_s8 + $0x4a] sm:$0xff] }
  0x37   : > { %439 = vrot.lane.b32.xlu0 %v1118_v10, %s1934_s11  ;;  %s1468_s11 = smov 48   ;;  %v1157_v1 = vld [vmem:[%s1591_s8 + $0x46] sm:$0xff]  ;;  %v1158_v3 = vld [vmem:[%s1591_s8 + $0x4e] sm:$0xff]  ;;  %v1151_v9 = vld [vmem:[%s1591_s8 + $0x5d] sm:$0xff] }
  0x38   : > { %1207 = vmatpush3.msra.mxu0 %v690_v39  ;;  %1245 = vmatpush3.msra.mxu1 %v690_v39  ;;  %v1124_v2 = vld [vmem:[%s1591_s8 + $0x4b] sm:$0xff]  ;;  %v1141_v4 = vld [vmem:[%s1591_s8 + $0x54] sm:$0xff]  ;;  %v1160_v13 = vld [vmem:[%s1591_s8 + $0x5e] sm:$0xff] }
  0x39   : > { %v1150_v8 = vld [vmem:[%s1591_s8 + $0x55] sm:$0xff]  ;;  %v821_v18 = vld [vmem:[%s1579_s24] sm:$0xff] }
  0x3a   : > { %339 = vrot.lane.b32.xlu1 %v1108_v6, %s1936_s9  ;;  %v823_v22 = vld [vmem:[%s1579_s24 + $0x10] sm:$0xff]  ;;  %v828_v30 = vld [vmem:[%s1579_s24 + $0x38] sm:$0xff] }
  0x3b   : > { %290 = vrot.lane.b32.xlu0 %v1093_v12, %s1464_s10  ;;  %v1159_v12 = vld [vmem:[%s1591_s8 + $0x56] sm:$0xff] }
  0x3c   : > { %v827_v29 = vld [vmem:[%s1579_s24 + $0x30] sm:$0xff] }
  0x3e   : > { %539 = vrot.lane.b32.xlu1 %v1625_v16, %s1468_s11 }
  0x3f   : > { %490 = vrot.lane.b32.xlu0 %v1127_v17, %s1938_s12  ;;  %s1942_s12 = smov 32   ;;  %v822_v17 = vld [vmem:[%s1579_s24 + $0x8] sm:$0xff] }
  0x42   : > { %390 = vrot.lane.b32.xlu1 %v1110_v21, %s1465_s18 }
  0x43   : > { %341 = vrot.lane.b32.xlu0 %v1109_v5, %s1936_s9  ;;  %s1469_s9 = smov 56   ;;  %v1142_v5 = vld [vmem:[%s1591_s8 + $0x5c] sm:$0xff]  ;;  %s934_s8 = sshll.u32 %s1582_s29, 4  ;;  %s1846_s8 = int_to_ptr.vmem [resolvable:$true] %s934_s8 }
  0x46   : > { %590 = vrot.lane.b32.xlu1 %v1144_v25, %s1469_s9  ;;  %v825_v25 = vld [vmem:[%s1579_s24 + $0x20] sm:$0xff] }
  0x47   : > { %541 = vrot.lane.b32.xlu0 %v1136_v26, %s1468_s11 }
  0x4a   : > { %441 = vrot.lane.b32.xlu1 %v1119_v31, %s1942_s12 }
  0x4b   : > { %392 = vrot.lane.b32.xlu0 %v1111_v32, %s1465_s18 }
  0x4e   : > { %641 = vrot.lane.b32.xlu1 %v1153_v36, %s1470_s23 }
  0x4f   : > { %592 = vrot.lane.b32.xlu0 %v1145_v37, %s1469_s9 }
  0x52   : > { %443 = vrot.lane.b32.xlu1 %v1120_v40, %s1942_s12 }
  0x53   : > { %292 = vrot.lane.b32.xlu0 %v1094_v41, %s1464_s10 }
  0x56   : > { %643 = vrot.lane.b32.xlu1 %v1154_v42, %s1470_s23 }
  0x57   : > { %492 = vrot.lane.b32.xlu0 %v1625_v16, %s1943_s7 }
  0x5a   : > { %343 = vrot.lane.b32.xlu1 %v1110_v21, %s1944_s13  ;;  %v824_v21 = vld [vmem:[%s1579_s24 + $0x18] sm:$0xff] }
  0x5b   : > { %294 = vrot.lane.b32.xlu0 %v1095_v43, %s1464_s10 }
  0x5e   : > { %543 = vrot.lane.b32.xlu1 %v1137_v44, %s1468_s11 }
  0x5f   : > { %494 = vrot.lane.b32.xlu0 %v1136_v26, %s1943_s7  ;;  %v826_v26 = vld [vmem:[%s1579_s24 + $0x28] sm:$0xff]  ;;  %s1169_s24 = sshll.u32 %s1448_s19, 4 }
  0x60   : > { %s1852_s14 = scalar_lea.hbm %s1933_s4, %s1169_s24 }
  0x62   : > { %394 = vrot.lane.b32.xlu1 %v1112_v45, %s1465_s18 }
  0x63   : > { %345 = vrot.lane.b32.xlu0 %v1111_v32, %s1944_s13 }
  0x66   : > { %594 = vrot.lane.b32.xlu1 %v1146_v46, %s1469_s9 }
  0x67   : > { %545 = vrot.lane.b32.xlu0 %v1138_v47, %s1468_s11 }
  0x6a   : > { %445 = vrot.lane.b32.xlu1 %v1121_v49, %s1942_s12 }
  0x6b   : > { %396 = vrot.lane.b32.xlu0 %v1113_v50, %s1465_s18 }
  0x6e   : > { %645 = vrot.lane.b32.xlu1 %v1155_v51, %s1470_s23 }
  0x6f   : > { %596 = vrot.lane.b32.xlu0 %v1147_v52, %s1469_s9 }
  0x72   : > { %447 = vrot.lane.b32.xlu1 %v1122_v54, %s1942_s12 }
  0x73   : > { %296 = vrot.lane.b32.xlu0 %v1096_v55, %s1464_s10 }
  0x76   : > { %647 = vrot.lane.b32.xlu1 %v1156_v56, %s1470_s23 }
  0x77   : > { %496 = vrot.lane.b32.xlu0 %v1137_v44, %s1943_s7 }
  0x7a   : > { %347 = vrot.lane.b32.xlu1 %v1112_v45, %s1944_s13 }
  0x7b   : > { %298 = vrot.lane.b32.xlu0 %v1097_v57, %s1464_s10 }
  0x7e   : > { %547 = vrot.lane.b32.xlu1 %v1139_v58, %s1468_s11 }
  0x7f   : > { %498 = vrot.lane.b32.xlu0 %v1138_v47, %s1943_s7 }
  0x82   : > { %398 = vrot.lane.b32.xlu1 %v1114_v59, %s1465_s18 }
  0x83   : > { %349 = vrot.lane.b32.xlu0 %v1113_v50, %s1944_s13  ;;  %s1472_s13 = smov [#allocation3]  }
  0x84   : > { %s1338_s10 = sshll.u32 %s1472_s13, 4  ;;  %s1339_s10 = int_to_ptr.vmem [resolvable:$false] %s1338_s10 }
  0x85   : > { %p1341_p5 = scmp.lt.s32.totalorder %s1846_s8, %s1339_s10 }
  0x86   : > { %598 = vrot.lane.b32.xlu1 %v1148_v61, %s1469_s9 }
  0x87   : > { %549 = vrot.lane.b32.xlu0 %v1140_v60, %s1468_s11 }
  0x8a   : > { %449 = vrot.lane.b32.xlu1 %v1123_v63, %s1942_s12 }
  0x8b   : > { %400 = vrot.lane.b32.xlu0 %v1115_v62, %s1465_s18  ;;  %s1340_s18 = scalar_lea.vmem %s1339_s10, 32 }
  0x8e   : > { %649 = vrot.lane.b32.xlu1 %v1157_v1, %s1470_s23 }
  0x8f   : > { %600 = vrot.lane.b32.xlu0 %v1149_v0, %s1469_s9 }
  0x92   : > { %500 = vrot.lane.b32.xlu1 %v1139_v58, %s1943_s7 }
  0x93   : > { %451 = vrot.lane.b32.xlu0 %v1124_v2, %s1942_s12 }
  0x96   : > { %502 = vrot.lane.b32.xlu1 %v1140_v60, %s1943_s7  ;;  %s1334_s7 = scalar_lea.vmem %s1846_s8, 16 }
  0x97   : > { %651 = vrot.lane.b32.xlu0 %v1158_v3, %s1470_s23  ;;  %p1335_p1 = scmp.ne.s32.totalorder %s1846_s8, %s1334_s7  ;;  %p1342_p6 = scmp.lt.s32.totalorder %s1340_s18, %s1334_s7 }
  0x98   : > { %v336_v6 = vpop.permute.xlu1 %335 }
  0x99   : > { %v285_v7 = vpop.permute.xlu0 %284  ;;  %p1336_p2 = pnand %p1335_p1, %p1548_p3  ;;  %p1343_p7 = por %p1342_p6, %p1341_p5 }
  0x9a   : > { %309 = vst.msk [vmem:[#allocation2] sm:$0xff] %vm308_vm1, %v285_v7  ;;  %553 = vrot.lane.b32.xlu1 %v1142_v5, %s1468_s11 }
  0x9b   : > { %551 = vrot.lane.b32.xlu0 %v1141_v4, %s1468_s11  ;;  %360 = vst.msk [vmem:[#allocation2] sm:$0xff] %vm359_vm2, %v336_v6  ;;  %s1844_s11 = scalar_lea.hbm %s1932_s3, %s1169_s24  ;;  %p1337_p4 = pneg %p1336_p2 }
  0x9c   : > { %v338_v10 = vpop.permute.xlu1 %337 }
  0x9d   : > { %v287_v11 = vpop.permute.xlu0 %286  ;;  %p1344_p8 = pnand %p1343_p7, %p1337_p4 }
  0x9e   : > { %310 = vst.msk [vmem:[#allocation2 + $0x8] sm:$0xff] %vm308_vm1, %v287_v11  ;;  %604 = vrot.lane.b32.xlu1 %v1151_v9, %s1469_s9 }
  0x9f   : > { %602 = vrot.lane.b32.xlu0 %v1150_v8, %s1469_s9  ;;  %361 = vst.msk [vmem:[#allocation2 + $0x8] sm:$0xff] %vm359_vm2, %v338_v10  ;;  %s947_s9 = sshll.u32 %s1585_s30, 4  ;;  %s1854_s9 = int_to_ptr.vmem [resolvable:$true] %s947_s9 }
  0xa0   : > { %v389_v15 = vpop.permute.xlu1 %388 }
  0xa1   : > { %v387_v16 = vpop.permute.xlu0 %386  ;;  %412 = vst.msk [vmem:[#allocation2 + $0x8] sm:$0xff] %vm410_vm3, %v389_v15 }
  0xa2   : > { %411 = vst.msk [vmem:[#allocation2] sm:$0xff] %vm410_vm3, %v387_v16  ;;  %655 = vrot.lane.b32.xlu1 %v1160_v13, %s1470_s23 }
  0xa3   : > { %653 = vrot.lane.b32.xlu0 %v1159_v12, %s1470_s23  ;;  %s918_s23 = scalar_lea.sflag [#allocation4], %s1569_s6 }
  0xa4   : > { %v289_v19 = vpop.permute.xlu1 %288 }
  0xa5   : > { %v438_v20 = vpop.permute.xlu0 %437  ;;  %311 = vst.msk [vmem:[#allocation2 + $0x10] sm:$0xff] %vm308_vm1, %v289_v19 }
  0xa6   : > { %462 = vst.msk [vmem:[#allocation2] sm:$0xff] %vm461_vm4, %v438_v20  ;;  %836 = vperm.xlu1 %1333, %v822_v17  }
  0xa7   : > { %831 = vperm.xlu0 %1332, %v821_v18  }
  0xa8   : > { %v489_v23 = vpop.permute.xlu1 %488 }
  0xa9   : > { %v440_v24 = vpop.permute.xlu0 %439  ;;  %513 = vst.msk [vmem:[#allocation2] sm:$0xff] %vm512_vm5, %v489_v23 }
  0xaa   : > { %463 = vst.msk [vmem:[#allocation2 + $0x8] sm:$0xff] %vm461_vm4, %v440_v24  ;;  %841 = vperm.xlu1 %1333, %v823_v22  }
  0xab   : > { %846 = vperm.xlu0 %1332, %v824_v21  }
  0xac   : > { %v340_v27 = vpop.permute.xlu1 %339 }
  0xad   : > { %v291_v28 = vpop.permute.xlu0 %290  ;;  %362 = vst.msk [vmem:[#allocation2 + $0x10] sm:$0xff] %vm359_vm2, %v340_v27 }
  0xae   : > { %312 = vst.msk [vmem:[#allocation2 + $0x18] sm:$0xff] %vm308_vm1, %v291_v28  ;;  %851 = vperm.xlu1 %1333, %v825_v25  }
  0xaf   : > { %856 = vperm.xlu0 %1332, %v826_v26  }
  0xb0   : > { %v540_v31 = vpop.permute.xlu1 %539 }
  0xb1   : > { %v491_v32 = vpop.permute.xlu0 %490  ;;  %564 = vst.msk [vmem:[#allocation2] sm:$0xff] %vm563_vm6, %v540_v31 }
  0xb2   : > { %514 = vst.msk [vmem:[#allocation2 + $0x8] sm:$0xff] %vm512_vm5, %v491_v32  ;;  %861 = vperm.xlu1 %1333, %v827_v29  }
  0xb3   : > { %866 = vperm.xlu0 %1332, %v828_v30  }
  0xb4   : > { %v391_v33 = vpop.permute.xlu1 %390 }
  0xb5   : > { %v342_v34 = vpop.permute.xlu0 %341  ;;  %413 = vst.msk [vmem:[#allocation2 + $0x10] sm:$0xff] %vm410_vm3, %v391_v33 }
  0xb6   : > { %363 = vst.msk [vmem:[#allocation2 + $0x18] sm:$0xff] %vm359_vm2, %v342_v34 }
  0xb8   : > { %v591_v35 = vpop.permute.xlu1 %590 }
  0xb9   : > { %v542_v36 = vpop.permute.xlu0 %541  ;;  %615 = vst.msk [vmem:[#allocation2] sm:$0xff] %vm614_vm7, %v591_v35 }
  0xba   : > { %565 = vst.msk [vmem:[#allocation2 + $0x8] sm:$0xff] %vm563_vm6, %v542_v36 }
  0xbc   : > { %v442_v37 = vpop.permute.xlu1 %441 }
  0xbd   : > { %v393_v38 = vpop.permute.xlu0 %392  ;;  %464 = vst.msk [vmem:[#allocation2 + $0x10] sm:$0xff] %vm461_vm4, %v442_v37 }
  0xbe   : > { %414 = vst.msk [vmem:[#allocation2 + $0x18] sm:$0xff] %vm410_vm3, %v393_v38 }
  0xc0   : > { %v642_v39 = vpop.permute.xlu1 %641 }
  0xc1   : > { %v593_v40 = vpop.permute.xlu0 %592  ;;  %666 = vst.msk [vmem:[#allocation2] sm:$0xff] %vm665_vm8, %v642_v39 }
  0xc2   : > { %616 = vst.msk [vmem:[#allocation2 + $0x8] sm:$0xff] %vm614_vm7, %v593_v40 }
  0xc4   : > { %v444_v41 = vpop.permute.xlu1 %443 }
  0xc5   : > { %v293_v42 = vpop.permute.xlu0 %292  ;;  %465 = vst.msk [vmem:[#allocation2 + $0x18] sm:$0xff] %vm461_vm4, %v444_v41 }
  0xc6   : > { %313 = vst.msk [vmem:[#allocation2 + $0x20] sm:$0xff] %vm308_vm1, %v293_v42 }
  0xc8   : > { %v644_v43 = vpop.permute.xlu1 %643  ;;  %v674_v45 = vld [vmem:[#allocation2] sm:$0xff] }
  0xc9   : > { %v493_v44 = vpop.permute.xlu0 %492  ;;  %667 = vst.msk [vmem:[#allocation2 + $0x8] sm:$0xff] %vm665_vm8, %v644_v43  ;;  %1208 = vmatprep.mubr.msk.f32.mxu0 %vm691_vm9, %v674_v45 }
  0xca   : > { %515 = vst.msk [vmem:[#allocation2 + $0x10] sm:$0xff] %vm512_vm5, %v493_v44 }
  0xcc   : > { %v344_v46 = vpop.permute.xlu1 %343 }
  0xcd   : > { %v295_v47 = vpop.permute.xlu0 %294  ;;  %364 = vst.msk [vmem:[#allocation2 + $0x20] sm:$0xff] %vm359_vm2, %v344_v46 }
  0xce   : > { %314 = vst.msk [vmem:[#allocation2 + $0x28] sm:$0xff] %vm308_vm1, %v295_v47 }
  0xd0   : > { %v544_v48 = vpop.permute.xlu1 %543  ;;  %v675_v50 = vld [vmem:[#allocation2 + $0x8] sm:$0xff] }
  0xd1   : > { %v495_v49 = vpop.permute.xlu0 %494  ;;  %566 = vst.msk [vmem:[#allocation2 + $0x10] sm:$0xff] %vm563_vm6, %v544_v48  ;;  %1209 = vmatmul.mubr.msk.f32.vlgmr.msra.gmra.mrb[0].mxu0 %vm691_vm9, %v675_v50 }
  0xd2   : > { %516 = vst.msk [vmem:[#allocation2 + $0x18] sm:$0xff] %vm512_vm5, %v495_v49 }
  0xd4   : > { %v395_v51 = vpop.permute.xlu1 %394 }
  0xd5   : > { %v346_v52 = vpop.permute.xlu0 %345  ;;  %415 = vst.msk [vmem:[#allocation2 + $0x20] sm:$0xff] %vm410_vm3, %v395_v51 }
  0xd6   : > { %365 = vst.msk [vmem:[#allocation2 + $0x28] sm:$0xff] %vm359_vm2, %v346_v52 }
  0xd8   : > { %v595_v53 = vpop.permute.xlu1 %594 }
  0xd9   : > { %v546_v54 = vpop.permute.xlu0 %545  ;;  %617 = vst.msk [vmem:[#allocation2 + $0x10] sm:$0xff] %vm614_vm7, %v595_v53 }
  0xda   : > { %567 = vst.msk [vmem:[#allocation2 + $0x18] sm:$0xff] %vm563_vm6, %v546_v54 }
  0xdc   : > { %v446_v55 = vpop.permute.xlu1 %445 }
  0xdd   : > { %v397_v56 = vpop.permute.xlu0 %396  ;;  %466 = vst.msk [vmem:[#allocation2 + $0x20] sm:$0xff] %vm461_vm4, %v446_v55 }
  0xde   : > { %416 = vst.msk [vmem:[#allocation2 + $0x28] sm:$0xff] %vm410_vm3, %v397_v56 }
  0xe0   : > { %v646_v57 = vpop.permute.xlu1 %645 }
  0xe1   : > { %v597_v58 = vpop.permute.xlu0 %596  ;;  %668 = vst.msk [vmem:[#allocation2 + $0x10] sm:$0xff] %vm665_vm8, %v646_v57 }
  0xe2   : > { %618 = vst.msk [vmem:[#allocation2 + $0x18] sm:$0xff] %vm614_vm7, %v597_v58 }
  0xe4   : > { %v448_v59 = vpop.permute.xlu1 %447 }
  0xe5   : > { %v297_v60 = vpop.permute.xlu0 %296  ;;  %467 = vst.msk [vmem:[#allocation2 + $0x28] sm:$0xff] %vm461_vm4, %v448_v59 }
  0xe6   : > { %315 = vst.msk [vmem:[#allocation2 + $0x30] sm:$0xff] %vm308_vm1, %v297_v60 }
  0xe8   : > { %v648_v61 = vpop.permute.xlu1 %647  ;;  %v676_v63 = vld [vmem:[#allocation2 + $0x10] sm:$0xff] }
  0xe9   : > { %v497_v62 = vpop.permute.xlu0 %496  ;;  %669 = vst.msk [vmem:[#allocation2 + $0x18] sm:$0xff] %vm665_vm8, %v648_v61  ;;  %1211 = vmatprep.mubr.msk.f32.mxu0 %vm691_vm9, %v676_v63 }
  0xea   : > { %517 = vst.msk [vmem:[#allocation2 + $0x20] sm:$0xff] %vm512_vm5, %v497_v62 }
  0xec   : > { %v348_v1 = vpop.permute.xlu1 %347 }
  0xed   : > { %v299_v0 = vpop.permute.xlu0 %298  ;;  %366 = vst.msk [vmem:[#allocation2 + $0x30] sm:$0xff] %vm359_vm2, %v348_v1 }
  0xee   : > { %316 = vst.msk [vmem:[#allocation2 + $0x38] sm:$0xff] %vm308_vm1, %v299_v0 }
  0xf0   : > { %v548_v3 = vpop.permute.xlu1 %547  ;;  %v677_v4 = vld [vmem:[#allocation2 + $0x18] sm:$0xff] }
  0xf1   : > { %v499_v2 = vpop.permute.xlu0 %498  ;;  %568 = vst.msk [vmem:[#allocation2 + $0x20] sm:$0xff] %vm563_vm6, %v548_v3  ;;  %1212 = vmatmul.mubr.msk.f32.gmra.mrb[2].mxu0 %vm691_vm9, %v677_v4 }
  0xf2   : > { %518 = vst.msk [vmem:[#allocation2 + $0x28] sm:$0xff] %vm512_vm5, %v499_v2 }
  0xf4   : > { %v399_v6 = vpop.permute.xlu1 %398 }
  0xf5   : > { %v350_v5 = vpop.permute.xlu0 %349  ;;  %417 = vst.msk [vmem:[#allocation2 + $0x30] sm:$0xff] %vm410_vm3, %v399_v6 }
  0xf6   : > { %367 = vst.msk [vmem:[#allocation2 + $0x38] sm:$0xff] %vm359_vm2, %v350_v5 }
  0xf8   : > { %v599_v8 = vpop.permute.xlu1 %598 }
  0xf9   : > { %v550_v7 = vpop.permute.xlu0 %549  ;;  %619 = vst.msk [vmem:[#allocation2 + $0x20] sm:$0xff] %vm614_vm7, %v599_v8 }
  0xfa   : > { %569 = vst.msk [vmem:[#allocation2 + $0x28] sm:$0xff] %vm563_vm6, %v550_v7 }
  0xfc   : > { %v450_v10 = vpop.permute.xlu1 %449 }
  0xfd   : > { %v401_v9 = vpop.permute.xlu0 %400  ;;  %468 = vst.msk [vmem:[#allocation2 + $0x30] sm:$0xff] %vm461_vm4, %v450_v10 }
  0xfe   : > { %418 = vst.msk [vmem:[#allocation2 + $0x38] sm:$0xff] %vm410_vm3, %v401_v9 }
 0x100   : > { %v650_v12 = vpop.permute.xlu1 %649 }
 0x101   : > { %v601_v11 = vpop.permute.xlu0 %600  ;;  %670 = vst.msk [vmem:[#allocation2 + $0x20] sm:$0xff] %vm665_vm8, %v650_v12 }
 0x102   : > { %620 = vst.msk [vmem:[#allocation2 + $0x28] sm:$0xff] %vm614_vm7, %v601_v11 }
 0x104   : > { %v501_v14 = vpop.permute.xlu1 %500 }
 0x105   : > { %v452_v13 = vpop.permute.xlu0 %451  ;;  %519 = vst.msk [vmem:[#allocation2 + $0x30] sm:$0xff] %vm512_vm5, %v501_v14 }
 0x106   : > { %469 = vst.msk [vmem:[#allocation2 + $0x38] sm:$0xff] %vm461_vm4, %v452_v13 }
 0x108   : > { %v503_v16 = vpop.permute.xlu1 %502  ;;  %v678_v17 = vld [vmem:[#allocation2 + $0x20] sm:$0xff] }
 0x109   : > { %v652_v15 = vpop.permute.xlu0 %651  ;;  %520 = vst.msk [vmem:[#allocation2 + $0x38] sm:$0xff] %vm512_vm5, %v503_v16  ;;  %1214 = vmatprep.mubr.msk.f32.mxu1 %vm691_vm9, %v678_v17 }
 0x10a   : > { %671 = vst.msk [vmem:[#allocation2 + $0x28] sm:$0xff] %vm665_vm8, %v652_v15 }
 0x10c   : > { %v554_v19 = vpop.permute.xlu1 %553 }
 0x10d   : > { %v552_v18 = vpop.permute.xlu0 %551  ;;  %571 = vst.msk [vmem:[#allocation2 + $0x38] sm:$0xff] %vm563_vm6, %v554_v19 }
 0x10e   : > { %570 = vst.msk [vmem:[#allocation2 + $0x30] sm:$0xff] %vm563_vm6, %v552_v18  ;;  %v877_v18 = vld [vmem:[%s1582_s29] sm:$0x1] }
 0x110   : > { %v605_v21 = vpop.permute.xlu1 %604 }
 0x111   : > { %v603_v20 = vpop.permute.xlu0 %602  ;;  %v679_v22 = vld [vmem:[#allocation2 + $0x28] sm:$0xff]  ;;  %622 = vst.msk [vmem:[#allocation2 + $0x38] sm:$0xff] %vm614_vm7, %v605_v21  ;;  %v893_v21 = vld [vmem:[%s1585_s30] sm:$0x1] }
 0x112   : > { %621 = vst.msk [vmem:[#allocation2 + $0x30] sm:$0xff] %vm614_vm7, %v603_v20  ;;  %1215 = vmatmul.mubr.msk.f32.vlgmr.msra.gmra.mrb[0].mxu1 %vm691_vm9, %v679_v22 }
 0x114   : > { %v656_v24 = vpop.permute.xlu1 %655 }
 0x115   : > { %v654_v23 = vpop.permute.xlu0 %653  ;;  %673 = vst.msk [vmem:[#allocation2 + $0x38] sm:$0xff] %vm665_vm8, %v656_v24 }
 0x116   : > { %672 = vst.msk [vmem:[#allocation2 + $0x30] sm:$0xff] %vm665_vm8, %v654_v23 }
 0x11c   : > { %v681_v26 = vld [vmem:[#allocation2 + $0x38] sm:$0xff] }
 0x11d   : > { %v680_v25 = vld [vmem:[#allocation2 + $0x30] sm:$0xff] }
 0x11e   : > { %1217 = vmatprep.mubr.msk.f32.mxu1 %vm691_vm9, %v680_v25 }
 0x11f   : > { %1218 = vmatmul.mubr.msk.f32.gmra.mrb[2].mxu1 %vm691_vm9, %v681_v26 }
 0x125   : > { %v837_v27 = vpop.permute.xlu1 %836 }
 0x126   : > { %v832_v28 = vpop.permute.xlu0 %831 }
 0x129   : > { %v842_v38 = vpop.permute.xlu1 %841 }
 0x12a   : > { %v847_v37 = vpop.permute.xlu0 %846 }
 0x12d   : > { %v852_v51 = vpop.permute.xlu1 %851 }
 0x12e   : > { %v857_v49 = vpop.permute.xlu0 %856 }
 0x131   : > { %v862_v61 = vpop.permute.xlu1 %861 }
 0x132   : > { %v867_v63 = vpop.permute.xlu0 %866 }
 0x1a4   : > { %v1210_v29 = vpop.f32.mrb[0].mxu0 }
 0x1a5   : > { %v870_v30 = vmul.f32 %v1210_v29, %v837_v27  ;;  %v782_v31 = vpop.f32.mrb[1].mxu0 }
 0x1a6   : > { %v869_v32 = vmul.f32 %v832_v28, %v782_v31 }
 0x1a7   : > { %v895_v33 = vmul.f32 %v1210_v29, %v870_v30 }
 0x1a8   : > { %v878_v34 = vadd.f32 %v870_v30, %v869_v32  ;;  %v894_v35 = vmul.f32 %v869_v32, %v782_v31 }
 0x1aa   : > { %v902_v36 = vadd.f32 %v895_v33, %v894_v35 }
 0x1c4   : > { %v1213_v39 = vpop.f32.mrb[2].mxu0 }
 0x1c5   : > { %v792_v40 = vpop.f32.mrb[3].mxu0  ;;  %v872_v41 = vmul.f32 %v1213_v39, %v847_v37 }
 0x1c6   : > { %v871_v42 = vmul.f32 %v842_v38, %v792_v40 }
 0x1c7   : > { %v897_v45 = vmul.f32 %v1213_v39, %v872_v41 }
 0x1c8   : > { %v879_v43 = vadd.f32 %v878_v34, %v871_v42  ;;  %v896_v44 = vmul.f32 %v871_v42, %v792_v40 }
 0x1ca   : > { %v880_v46 = vadd.f32 %v879_v43, %v872_v41  ;;  %v903_v47 = vadd.f32 %v902_v36, %v896_v44 }
 0x1cc   : > { %v904_v48 = vadd.f32 %v903_v47, %v897_v45 }
 0x1e5   : > { %v1216_v50 = vpop.f32.mrb[0].mxu1 }
 0x1e6   : > { %v802_v52 = vpop.f32.mrb[1].mxu1  ;;  %v874_v53 = vmul.f32 %v1216_v50, %v857_v49 }
 0x1e7   : > { %v873_v54 = vmul.f32 %v852_v51, %v802_v52 }
 0x1e8   : > { %v899_v57 = vmul.f32 %v1216_v50, %v874_v53 }
 0x1e9   : > { %v881_v55 = vadd.f32 %v880_v46, %v873_v54  ;;  %v898_v56 = vmul.f32 %v873_v54, %v802_v52 }
 0x1eb   : > { %v905_v58 = vadd.f32 %v904_v48, %v898_v56  ;;  %v882_v59 = vadd.f32 %v881_v55, %v874_v53 }
 0x1ed   : > { %v906_v60 = vadd.f32 %v905_v58, %v899_v57 }
 0x1f2   : > { %v1219_v62 = vpop.f32.mrb[2].mxu1 }
 0x1f3   : > { %v812_v0 = vpop.f32.mrb[3].mxu1  ;;  %v876_v1 = vmul.f32 %v1219_v62, %v867_v63 }
 0x1f4   : > { %v875_v2 = vmul.f32 %v862_v61, %v812_v0 }
 0x1f5   : > { %v901_v5 = vmul.f32 %v1219_v62, %v876_v1 }
 0x1f6   : > { %v883_v3 = vadd.f32 %v882_v59, %v875_v2  ;;  %v900_v4 = vmul.f32 %v875_v2, %v812_v0 }
 0x1f8   : > { %v884_v6 = vadd.f32 %v883_v3, %v876_v1  ;;  %v907_v7 = vadd.f32 %v906_v60, %v900_v4 }
 0x1fa   : > { %v885_v8 = vrot.slane %v884_v6, 4  ;;  %v908_v9 = vadd.f32 %v907_v7, %v901_v5 }
 0x1fc   : > { %v886_v10 = vadd.f32 %v885_v8, %v884_v6  ;;  %v909_v11 = vrot.slane %v908_v9, 4 }
 0x1fe   : > { %v887_v12 = vrot.slane %v886_v10, 2  ;;  %v910_v13 = vadd.f32 %v909_v11, %v908_v9 }
 0x200   : > { %v888_v14 = vadd.f32 %v887_v12, %v886_v10  ;;  %v911_v15 = vrot.slane %v910_v13, 2 }
 0x202   : > { %v912_v16 = vadd.f32 %v911_v15, %v910_v13  ;;  %v889_v17 = vrot.slane %v888_v14, 1 }
 0x204   : > { %v890_v19 = vadd.f32 %v889_v17, %v888_v14  ;;  %v913_v20 = vrot.slane %v912_v16, 1 }
 0x206   : > { %v891_v22 = vadd.f32 %v890_v19, %v877_v18  ;;  %v914_v23 = vadd.f32 %v913_v20, %v912_v16 }
 0x208   : > { %892 = vst [vmem:[%s1582_s29] sm:$0x1] %v891_v22  ;;  %v915_v24 = vadd.f32 %v914_v23, %v893_v21 }
 0x209   : > { %1347 = shalt.err (!%p1344_p8)
}
 0x20a   : > { %s1348_s29 = scalar_lea.hbm %s1844_s11, 16  ;;  %s1352_s12 = scalar_lea.hbm %s1932_s3, 32 }
 0x20b   : > { %p1349_p10 = scmp.ne.s32.totalorder %s1844_s11, %s1348_s29  ;;  %p1353_p13 = scmp.lt.u32.totalorder %s1844_s11, %s1932_s3 }
 0x20c   : > { %p1354_p0 = scmp.lt.u32.totalorder %s1352_s12, %s1348_s29  ;;  %p1356_p2 = scmp.lt.u32.totalorder %s1348_s29, %s1844_s11 }
 0x20d   : > { %p1350_p11 = pnand %p1349_p10, %p1548_p3 }
 0x20e   : > { %p1355_p1 = por %p1354_p0, %p1353_p13 }
 0x20f   : > { %p1351_p12 = pneg %p1350_p11 }
 0x210   : > { %p1357_p4 = por %p1356_p2, %p1355_p1 }
 0x212   : > { %p1358_p5 = pnand %p1357_p4, %p1351_p12 }
 0x214   : > { %1361 = shalt.err (!%p1358_p5)
}
 0x215   : > { %1246 = dma.vmem_to_hbm [thread:$0]  (%p1548_p3), %s1846_s8, 16, %s1844_s11, %s918_s23   ;;  %916 = vst [vmem:[%s1585_s30] sm:$0x1] %v915_v24 }
 0x216   : > { %s922_s7 = scalar_lea.sflag [#allocation6], %s1569_s6  ;;  %s1362_s18 = scalar_lea.vmem %s1854_s9, 16 }
 0x217   : > { %p1363_p6 = scmp.ne.s32.totalorder %s1854_s9, %s1362_s18  ;;  %s1473_s29 = smov [#allocation5]  }
 0x218   : > { %s1366_s24 = sshll.u32 %s1473_s29, 4  ;;  %s1367_s24 = int_to_ptr.vmem [resolvable:$false] %s1366_s24 }
 0x219   : > { %p1364_p7 = pnand %p1363_p6, %p1548_p3  ;;  %s1368_s19 = scalar_lea.vmem %s1367_s24, 32 }
 0x21a   : > { %p1369_p10 = scmp.lt.s32.totalorder %s1854_s9, %s1367_s24  ;;  %p1370_p11 = scmp.lt.s32.totalorder %s1368_s19, %s1362_s18 }
 0x21b   : > { %p1365_p8 = pneg %p1364_p7 }
 0x21c   : > { %p1371_p12 = por %p1370_p11, %p1369_p10 }
 0x21e   : > { %p1372_p13 = pnand %p1371_p12, %p1365_p8 }
 0x220   : > { %1375 = shalt.err (!%p1372_p13)
}
 0x221   : > { %s1376_s6 = scalar_lea.hbm %s1852_s14, 16  ;;  %s1380_s11 = scalar_lea.hbm %s1933_s4, 32 }
 0x222   : > { %p1377_p0 = scmp.ne.s32.totalorder %s1852_s14, %s1376_s6  ;;  %p1381_p4 = scmp.lt.u32.totalorder %s1852_s14, %s1933_s4 }
 0x223   : > { %p1382_p5 = scmp.lt.u32.totalorder %s1380_s11, %s1376_s6  ;;  %p1384_p7 = scmp.lt.u32.totalorder %s1376_s6, %s1852_s14 }
 0x224   : > { %p1378_p1 = pnand %p1377_p0, %p1548_p3 }
 0x225   : > { %p1383_p6 = por %p1382_p5, %p1381_p4 }
 0x226   : > { %p1379_p2 = pneg %p1378_p1 }
 0x227   : > { %p1385_p8 = por %p1384_p7, %p1383_p6 }
 0x229   : > { %p1386_p10 = pnand %p1385_p8, %p1379_p2 }
 0x22b   : > { %1389 = shalt.err (!%p1386_p10)
}
 0x22c   : > { %1247 = dma.vmem_to_hbm [thread:$0]  (%p1548_p3), %s1854_s9, 16, %s1852_s14, %s922_s7  }
 0x22d PF: > { %p1257_p11 = scmp.ge.s32.totalorder %s1460_s22, 2  ;;  %s959_s13 = sand.u32 1, %s1432_s15  }
 0x22e   : > { %s960_s10 = scalar_lea.sflag [#allocation4], %s959_s13 }
 0x22f   : > { %p1251_p12 = pnand %p1257_p11, %p1558_p9 }
 0x231   : > { %1423 = dma.done.wait (!%p1251_p12), %s960_s10, 16  }
 0x232   : > { %1425 = vsyncadd (!%p1251_p12), %s960_s10, 4294967280  ;;  %s968_s18 = scalar_lea.sflag [#allocation6], %s959_s13 }
 0x233   : > { %1427 = dma.done.wait (!%p1251_p12), %s968_s18, 16  }
 0x234   : > { %1429 = vsyncadd (!%p1251_p12), %s968_s18, 4294967280  ;;  %s21_s22 = sadd.s32 1, %s1460_s22   ;;  %s1945_s15 = smov %s1436_s16 }
 0x235   : > { %p18_p13 = scmp.ge.s32.totalorder %s21_s22, 12   ;;  %s1946_s16 = smov %s1440_s17 }
 0x236   : > { %s1947_s17 = smov %s1566_s5  ;;  %s1948_s18 = smov %s1452_s20 }
 0x237   : > { %s1949_s19 = smov %s1456_s21  ;;  %s1950_s20 = smov %s1953_s25 }
 0x238   : > { %s1951_s21 = smov %s1957_s26  ;;  %20 = sbr.rel (!%p18_p13) target bundleno = 7 (0x7), region = 100 }
 0x23f   :  { %972 = vsyncpa [#allocation4], 1 }
 0x240   :  { %974 = vsyncpa [#allocation4 + $0x1], 1 }
 0x241   :  { %975 = vsyncpa [#allocation6], 1 }
 0x242   :  { %977 = vsyncpa [#allocation6 + $0x1], 1 }

</bundles_post_ra>
